<compile_context>
chip_gen: v5e
topology: v5e:2x2
jax: 0.10.0
libtpu: 0.0.40
codegen_flags: <defaults>
</compile_context>

<pallas_src>
import math

import jax
import jax.numpy as jnp
from jax import lax
from jax.experimental import pallas as pl
from jax.experimental.pallas import tpu as pltpu


def _cdiv(a, b):
    return -(-a // b)


def _round_up(n, m):
    return _cdiv(n, m) * m


def _choose_tm(M, tm_max, min_steps):
    """M tile: as large as possible, but with enough grid steps that both
    TensorCores on v7x still see several pipelined steps for small M."""
    tm = min(tm_max, M)
    if M >= 128 * min_steps and tm * min_steps > M:
        tm = _round_up(_cdiv(M, min_steps), 128)
    if tm < M:
        tm = _round_up(tm, 8)            # (8, 128) block-shape constraint
    return min(tm, M)


def _choose_tk(K, E, tk_max):
    """K tile: lane-aligned, capped so the double-buffered bf16 weight tile
    stays a few MiB (fits v7x's scoped VMEM alongside LHS/output tiles)."""
    tk = min(_round_up(K, 128), _round_up(tk_max, 128))
    max_w_bytes = 4 * 1024 * 1024
    cap = max(128, (max_w_bytes // (2 * max(E, 1))) // 128 * 128)
    return max(128, min(tk, cap))


# ---------------------------------------------------------------------------
# Pallas kernel: (patches @ W) with f32 accumulation over K tiles + DyT epilogue
# ---------------------------------------------------------------------------
def _proj_dyt_kernel(p_ref, w_ref, c_ref, o_ref, acc_ref):
    # p_ref  : (tm, tk)  bf16 im2col patch tile
    # w_ref  : (tk, E)   bf16 projection-weight tile
    # c_ref  : (4,  E)   f32 constants: rows = [alpha*bias, dyt_w, dyt_b, alpha]
    # o_ref  : (tm, E)   output tile (lane axis = embed_dim -> lane-dense store)
    # acc_ref: (tm, E)   f32 VMEM accumulator, persists across the K grid axis
    k = pl.program_id(1)

    @pl.when(k == 0)
    def _():
        acc_ref[...] = jnp.zeros_like(acc_ref)

    acc_ref[...] += jnp.dot(p_ref[...], w_ref[...],
                            preferred_element_type=jnp.float32)

    @pl.when(k == pl.num_programs(1) - 1)
    def _():
        ab    = c_ref[0:1, :]          # alpha * conv bias
        gamma = c_ref[1:2, :]          # DyT weight
        beta  = c_ref[2:3, :]          # DyT bias
        alpha = c_ref[3:4, :]          # DyT alpha (replicated along E)
        y = jnp.tanh(acc_ref[...] * alpha + ab)   # tanh(alpha * (conv(x) + b))
        o_ref[...] = (y * gamma + beta).astype(o_ref.dtype)


def overlap_patch_embed(x, proj_w, proj_b, alpha, dyt_w, dyt_b, *,
                        stride=4, tm_max=1024, tk_max=2048, min_m_steps=8,
                        out_dtype=None):
    """Forward of OverlapPatchEmbed.

    x:       (N, C_in, D, H, W)
    proj_w:  (E, C_in, kD, kH, kW)   Conv3d weight
    proj_b:  (E,)                    Conv3d bias
    alpha:   (1,)                    DyT alpha
    dyt_w:   (E,)                    DyT weight
    dyt_b:   (E,)                    DyT bias
    Returns: (out of shape (N, D*H*W, E), D, H, W)

    Note: GEMM operands are cast to bf16 (f32 accumulation).  Inputs that are
    not bf16-representable see bf16-level error vs. an f32 reference conv.
    """
    N, C, _, _, _ = x.shape
    E, Cw, kD, kH, kW = proj_w.shape
    assert Cw == C
    pad = (kD // 2, kH // 2, kW // 2)
    out_dtype = x.dtype if out_dtype is None else out_dtype

    K = C * kD * kH * kW
    tk = _choose_tk(K, E, tk_max)
    K_pad = _round_up(K, tk)

    # --- patch extraction: one fused XLA identity-kernel conv, emitted in
    #     channel-last layout (feature dim ordered (C, kD, kH, kW), matching
    #     proj_w.reshape(E, K)); no separate transpose of the patch matrix. ---
    xb = x.astype(jnp.bfloat16)
    patches = lax.conv_general_dilated_patches(
        xb, filter_shape=(kD, kH, kW), window_strides=(stride,) * 3,
        padding=[(pad[0], pad[0]), (pad[1], pad[1]), (pad[2], pad[2])],
        dimension_numbers=("NCDHW", "OIDHW", "NDHWC"))
    Do, Ho, Wo = patches.shape[1:4]
    if K_pad != K:   # zero-pad K -> aligned DMAs + safe K-tiled reduction
        patches = jnp.pad(patches, ((0, 0),) * 4 + ((0, K_pad - K),))
    M = N * Do * Ho * Wo
    patches = patches.reshape(M, K_pad)

    # --- weights / fused constants (alpha kept out of the bf16 weight) ---
    w_mat = proj_w.reshape(E, K).T.astype(jnp.bfloat16)          # (K, E)
    if K_pad != K:
        w_mat = jnp.pad(w_mat, ((0, K_pad - K), (0, 0)))
    a = jnp.asarray(alpha, jnp.float32).reshape(())
    consts = jnp.stack([
        proj_b.astype(jnp.float32) * a,                          # alpha * bias
        dyt_w.astype(jnp.float32),                               # gamma
        dyt_b.astype(jnp.float32),                               # beta
        jnp.full((E,), a, jnp.float32),                          # alpha
    ])                                                           # (4, E)

    tm = _choose_tm(M, tm_max, min_m_steps)
    grid = (pl.cdiv(M, tm), K_pad // tk)

    out_mc = pl.pallas_call(
        _proj_dyt_kernel,
        out_shape=jax.ShapeDtypeStruct((M, E), out_dtype),
        grid_spec=pltpu.PrefetchScalarGridSpec(
            num_scalar_prefetch=0,
            grid=grid,
            in_specs=[
                pl.BlockSpec((tm, tk), lambda i, k: (i, k)),   # patch tile
                pl.BlockSpec((tk, E), lambda i, k: (k, 0)),    # weight tile
                pl.BlockSpec((4, E), lambda i, k: (0, 0)),     # constants
            ],
            out_specs=pl.BlockSpec((tm, E), lambda i, k: (i, 0)),
            scratch_shapes=[pltpu.VMEM((tm, E), jnp.float32)],
        ),
        compiler_params=pltpu.CompilerParams(
            dimension_semantics=("parallel", "arbitrary")),
    )(patches, w_mat, consts)

    # (M, E) is already the (N, num_patches, E) layout -- no transpose needed.
    return out_mc.reshape(N, Do * Ho * Wo, E), Do, Ho, Wo


def _reference(x, proj_w, proj_b, alpha, dyt_w, dyt_b, stride):
    """Pure-JAX reference: Conv3d -> flatten(2).transpose(1,2) -> DyT."""
    kD, kH, kW = proj_w.shape[2:]
    pad = [(kD // 2, kD // 2), (kH // 2, kH // 2), (kW // 2, kW // 2)]
    y = lax.conv_general_dilated(
        x, proj_w, window_strides=(stride, stride, stride), padding=pad,
        dimension_numbers=("NCDHW", "OIDHW", "NCDHW"),
        precision=lax.Precision.HIGHEST)
    y = y + proj_b[None, :, None, None, None]
    N, E, Do, Ho, Wo = y.shape
    y = y.reshape(N, E, Do * Ho * Wo).transpose(0, 2, 1)      # (N, P, E)
    y = jnp.tanh(alpha * y)
    return y * dyt_w + dyt_b, Do, Ho, Wo


if __name__ == "__main__":
    N = 2
    in_chans = 1
    embed_dim = 128        # multiple of 128 -> lane-dense output tiles
    block3d = 32           # -> D = H = W = 32 // 4 = 8 patches per axis
    patch_size = 7
    stride = 4

    key = jax.random.PRNGKey(0)
    k1, k2, k3, k4, k5 = jax.random.split(key, 5)
    x = jax.random.normal(
        k1, (N, in_chans, block3d, block3d, block3d), dtype=jnp.float32)

    fan_in = in_chans * patch_size ** 3
    bound = 1.0 / math.sqrt(fan_in)
    proj_w = jax.random.uniform(
        k2, (embed_dim, in_chans, patch_size, patch_size, patch_size),
        dtype=jnp.float32, minval=-bound, maxval=bound)
    proj_b = jax.random.uniform(k3, (embed_dim,), dtype=jnp.float32,
                                minval=-bound, maxval=bound)
    alpha = jnp.asarray([0.5], dtype=jnp.float32)                 # DyT default
    dyt_w = (jnp.ones((embed_dim,), jnp.float32)
             + 0.05 * jax.random.normal(k4, (embed_dim,), jnp.float32))
    dyt_b = 0.05 * jax.random.normal(k5, (embed_dim,), jnp.float32)

    # Round activations/weights to bf16-representable values so the bf16 MXU
    # matmul and the f32 reference conv form identical products; the comparison
    # then only sees f32 accumulation order, so it can be tight.
    x = x.astype(jnp.bfloat16).astype(jnp.float32)
    proj_w = proj_w.astype(jnp.bfloat16).astype(jnp.float32)

    out, D, H, W = overlap_patch_embed(
        x, proj_w, proj_b, alpha, dyt_w, dyt_b, stride=stride)
    out = jax.block_until_ready(out)

    ref, Dr, Hr, Wr = _reference(x, proj_w, proj_b, alpha, dyt_w, dyt_b, stride)
    assert (D, H, W) == (Dr, Hr, Wr) == (8, 8, 8)
    assert out.shape == (N, D * H * W, embed_dim)
    assert jnp.allclose(out, ref, atol=1e-4, rtol=1e-4)

    print("KERNEL_OK")
</pallas_src>

<mosaic_0001>
module attributes {stable_mosaic.version = 11 : i64} {
  func.func @_proj_dyt_kernel(%arg0: i32, %arg1: i32, %arg2: memref<128x384xbf16, #tpu.memory_space<vmem>>, %arg3: memref<384x128xbf16, #tpu.memory_space<vmem>>, %arg4: memref<4x128xf32, #tpu.memory_space<vmem>>, %arg5: memref<128x128xf32, #tpu.memory_space<vmem>>, %arg6: memref<128x128xf32, #tpu.memory_space<vmem>>) attributes {dimension_semantics = [#tpu.dimension_semantics<parallel>, #tpu.dimension_semantics<arbitrary>], iteration_bounds = array<i64: 8, 1>, scalar_prefetch = 0 : i64, scratch_operands = 1 : i64, tpu.core_type = #tpu.core_type<tc>, window_params = [{transform_indices = @transform_0, window_bounds = array<i64: 128, 384>}, {transform_indices = @transform_1, window_bounds = array<i64: 384, 128>}, {pipeline_mode = #tpu.pipeline_mode<synchronous>, transform_indices = @transform_2, window_bounds = array<i64: 4, 128>}, {transform_indices = @transform_3, window_bounds = array<i64: 128, 128>}]} {
    %c0_i32 = arith.constant 0 : i32
    %0 = arith.cmpi eq, %arg1, %c0_i32 : i32
    %1 = arith.extui %0 : i1 to i32
    %c0_i32_0 = arith.constant 0 : i32
    %2 = arith.cmpi ne, %1, %c0_i32_0 : i32
    scf.if %2 {
      %cst_10 = arith.constant 0.000000e+00 : f32
      %12 = vector.broadcast %cst_10 : f32 to vector<128x128xf32>
      %c0_11 = arith.constant 0 : index
      %c0_12 = arith.constant 0 : index
      %13 = vector.load %arg6[%c0_11, %c0_12] : memref<128x128xf32, #tpu.memory_space<vmem>>, vector<128x128xf32>
      tpu.vector_store %arg6[%c0_11, %c0_12], %12 {strides = array<i32>} : memref<128x128xf32, #tpu.memory_space<vmem>>, vector<128x128xf32>,
    } else {
    }
    %c0 = arith.constant 0 : index
    %c0_1 = arith.constant 0 : index
    %3 = vector.load %arg6[%c0, %c0_1] : memref<128x128xf32, #tpu.memory_space<vmem>>, vector<128x128xf32>
    %c0_2 = arith.constant 0 : index
    %c0_3 = arith.constant 0 : index
    %4 = vector.load %arg2[%c0_2, %c0_3] : memref<128x384xbf16, #tpu.memory_space<vmem>>, vector<128x384xbf16>
    %c0_4 = arith.constant 0 : index
    %c0_5 = arith.constant 0 : index
    %5 = vector.load %arg3[%c0_4, %c0_5] : memref<384x128xbf16, #tpu.memory_space<vmem>>, vector<384x128xbf16>
    %cst = arith.constant dense<0.000000e+00> : vector<128x128xf32>
    %6 = tpu.matmul %4, %5, %cst {dimension_numbers = #tpu.dot_dimension_numbers<[1], [0], [0], [1], [0, 0, 1, 1], [], []>} : vector<128x384xbf16>, vector<384x128xbf16>, vector<128x128xf32> -> vector<128x128xf32>
    %7 = arith.addf %3, %6 : vector<128x128xf32>
    %c0_6 = arith.constant 0 : index
    %c0_7 = arith.constant 0 : index
    %8 = vector.load %arg6[%c0_6, %c0_7] : memref<128x128xf32, #tpu.memory_space<vmem>>, vector<128x128xf32>
    tpu.vector_store %arg6[%c0_6, %c0_7], %7 {strides = array<i32>} : memref<128x128xf32, #tpu.memory_space<vmem>>, vector<128x128xf32>,
    %c0_i32_8 = arith.constant 0 : i32
    %9 = arith.cmpi eq, %arg1, %c0_i32_8 : i32
    %10 = arith.extui %9 : i1 to i32
    %c0_i32_9 = arith.constant 0 : i32
    %11 = arith.cmpi ne, %10, %c0_i32_9 : i32
    scf.if %11 {
      %c0_10 = arith.constant 0 : index
      %c0_11 = arith.constant 0 : index
      %12 = vector.load %arg4[%c0_10, %c0_11] : memref<4x128xf32, #tpu.memory_space<vmem>>, vector<1x128xf32>
      %c1 = arith.constant 1 : index
      %c0_12 = arith.constant 0 : index
      %13 = vector.load %arg4[%c1, %c0_12] : memref<4x128xf32, #tpu.memory_space<vmem>>, vector<1x128xf32>
      %c2 = arith.constant 2 : index
      %c0_13 = arith.constant 0 : index
      %14 = vector.load %arg4[%c2, %c0_13] : memref<4x128xf32, #tpu.memory_space<vmem>>, vector<1x128xf32>
      %c3 = arith.constant 3 : index
      %c0_14 = arith.constant 0 : index
      %15 = vector.load %arg4[%c3, %c0_14] : memref<4x128xf32, #tpu.memory_space<vmem>>, vector<1x128xf32>
      %c0_15 = arith.constant 0 : index
      %c0_16 = arith.constant 0 : index
      %16 = vector.load %arg6[%c0_15, %c0_16] : memref<128x128xf32, #tpu.memory_space<vmem>>, vector<128x128xf32>
      %17 = vector.broadcast %15 : vector<1x128xf32> to vector<128x128xf32>
      %18 = arith.mulf %16, %17 : vector<128x128xf32>
      %19 = vector.broadcast %12 : vector<1x128xf32> to vector<128x128xf32>
      %20 = arith.addf %18, %19 : vector<128x128xf32>
      %21 = math.tanh %20 : vector<128x128xf32>
      %22 = vector.broadcast %13 : vector<1x128xf32> to vector<128x128xf32>
      %23 = arith.mulf %21, %22 : vector<128x128xf32>
      %24 = vector.broadcast %14 : vector<1x128xf32> to vector<128x128xf32>
      %25 = arith.addf %23, %24 : vector<128x128xf32>
      %c0_17 = arith.constant 0 : index
      %c0_18 = arith.constant 0 : index
      %26 = vector.load %arg5[%c0_17, %c0_18] : memref<128x128xf32, #tpu.memory_space<vmem>>, vector<128x128xf32>
      tpu.vector_store %arg5[%c0_17, %c0_18], %25 {strides = array<i32>} : memref<128x128xf32, #tpu.memory_space<vmem>>, vector<128x128xf32>,
    } else {
    }
    return
  }
  func.func @transform_0(%arg0: i32, %arg1: i32) -> (i32, i32) {
    %c0_i32 = arith.constant 0 : i32
    return %arg0, %arg1 : i32, i32
  }
  func.func @transform_1(%arg0: i32, %arg1: i32) -> (i32, i32) {
    %c0_i32 = arith.constant 0 : i32
    %c0_i32_0 = arith.constant 0 : i32
    return %arg1, %c0_i32 : i32, i32
  }
  func.func @transform_2(%arg0: i32, %arg1: i32) -> (i32, i32) {
    %c0_i32 = arith.constant 0 : i32
    %c0_i32_0 = arith.constant 0 : i32
    %c0_i32_1 = arith.constant 0 : i32
    return %c0_i32, %c0_i32_0 : i32, i32
  }
  func.func @transform_3(%arg0: i32, %arg1: i32) -> (i32, i32) {
    %c0_i32 = arith.constant 0 : i32
    %c0_i32_0 = arith.constant 0 : i32
    return %arg0, %c0_i32 : i32, i32
  }
}

</mosaic_0001>

<bundles_post_ra>
// kernel: tpu_custom_call.1
= control target key start
LH: loop header
LB: loop body
LE: loop exit
PB: predicated region body
PF: predicated region fallthrough
CT: control target
= control target key end

     0   :  { %8 = vsyncpa [#allocation4], 0  ;;  %s2020_s0 = inlined_call_operand.hbm [shape: bf16[1024,384], index: 0, kind: input, shape index: {}]   ;;  %s2021_s1 = inlined_call_operand.hbm [shape: bf16[384,128], index: 1, kind: input, shape index: {}]   ;;  %s2022_s2 = inlined_call_operand.hbm [shape: f32[4,128], index: 2, kind: input, shape index: {}]   ;;  %s2023_s3 = inlined_call_operand.hbm [shape: f32[1024,128], index: 3, kind: output, shape index: {}]  }
   0x1   :  { %10 = vsyncpa [#allocation4 + $0x1], 0 }
   0x2   :  { %11 = vsyncpa [#allocation7], 0 }
   0x3   :  { %12 = vsyncpa [#allocation5], 0 }
   0x4   :  { %14 = vsyncpa [#allocation5 + $0x1], 0  ;;  %s1679_s12 = smov 0   ;;  %s1681_s13 = smov 0  }
   0x5   :  { %s1683_s14 = smov 0   ;;  %s1685_s15 = smov 0  }
   0x6   :  { %s1687_s16 = smov 0   ;;  %s1689_s17 = smov 0  }
   0x7 LB: > { %s1062_s18 = sadd.s32 4294967295, %s1649_s17   ;;  %s1063_s19 = sadd.s32 4294967294, %s1649_s17   ;;  %s1649_s17 = sphi %s1689_s17, %s20_s17   ;;  %s1645_s16 = sphi %s1687_s16, %s2034_s16   ;;  %s1641_s15 = sphi %s1685_s15, %s2033_s15   ;;  %s1637_s14 = sphi %s1683_s14, %s2032_s14   ;;  %s1633_s13 = sphi %s1681_s13, %s2031_s13   ;;  %s1629_s12 = sphi %s1679_s12, %s2030_s12  }
   0x8   : > { %p54_p0 = scmp.ne.s32.totalorder %s1633_s13, %s1629_s12  ;;  %p1713_p1 = scmp.eq.s32.totalorder %s1062_s18, 0 }
   0x9   : > { %p1717_p2 = scmp.eq.s32.totalorder %s1062_s18, 7  ;;  %p131_p3 = scmp.eq.s32.totalorder %s1063_s19, 7 }
   0xa   : > { %p1723_p4 = por %p1713_p1, %p54_p0  ;;  %p1064_p5 = scmp.ge.s32.totalorder %s1649_s17, 1 }
   0xb   : > { %p1728_p6 = por %p131_p3, %p54_p0  ;;  %p138_p7 = scmp.lt.s32.totalorder %s1649_s17, 9 }
   0xc   : > { %s152_s26 = sshll.u32 %s2021_s1, 4  ;;  %s1651_s28 = smov [#allocation6]   ;;  %s153_s26 = int_to_ptr.hbm [resolvable:$true] %s152_s26 }
   0xd   : > { %p1736_p8 = pnand %p1064_p5, %p138_p7  ;;  %s154_s29 = sshll.u32 %s1651_s28, 4  ;;  %s155_s29 = int_to_ptr.vmem [resolvable:$true] %s154_s29 }
   0xe   : > { %s167_s5 = sshll.u32 %s2022_s2, 4  ;;  %s1652_s6 = smov 64   ;;  %s168_s5 = int_to_ptr.hbm [resolvable:$true] %s167_s5 }
   0xf   : > { %p1360_p9 = pneg %p1736_p8  ;;  %s1653_s7 = smov 4  }
  0x10   : > { %s1654_s8 = smov [#allocation8]   ;;  %s32_s10 = sadd.s32 1, %s1645_s16 }
  0x11   : > { %p1361_p10 = pnand %p1360_p9, %p1713_p1  ;;  %s169_s9 = sshll.u32 %s1654_s8, 4  ;;  %s170_s9 = int_to_ptr.vmem [resolvable:$true] %s169_s9 }
  0x12   : > { %s41_s11 = sadd.s32 1, %s1637_s14  ;;  %p34_p11 = scmp.ge.s32.totalorder %s32_s10, 8 }
  0x13   : > { %1363 = dma.hbm_to_vmem [thread:$0]  (!%p1361_p10), %s153_s26, 3072, %s155_s29, [#allocation7], %s1652_s6, %s1652_s6, %s1653_s7  }
  0x14   : > { %1366 = dma.hbm_to_vmem [thread:$0]  (!%p1361_p10), %s168_s5, 64, %s170_s9, [#allocation7]  }
  0x15   : > { %p48_p12 = scmp.ne.s32.totalorder %s1637_s14, %s1633_s13  ;;  %p49_p13 = scmp.eq.s32.totalorder %s1649_s17, 0 }
  0x16   : > { %p1377_p0 = scmp.lt.s32.totalorder %s1649_s17, 8  ;;  %s2036_s10 = smov (%p34_p11, %s32_s10), 0 }
  0x17   : > { %p50_p3 = por %p49_p13, %p48_p12  ;;  %p1757_p5 = por %p1717_p2, %p48_p12 }
  0x18   : > { %s36_s19 = ssub.s32 %s1645_s16, %s2036_s10  ;;  %s180_s24 = sand.u32 1, %s1637_s14  }
  0x19   : > { %p39_p7 = scmp.eq.s32.totalorder %s36_s19, 0  ;;  %s1345_s25 = smul.u32 192, %s180_s24 }
  0x1a   : > { %p1368_p9 = pnand %p1377_p0, %p50_p3  ;;  %s1346_s28 = smul.u32 192, %s1645_s16 }
  0x1b   : > { %s1765_s26 = scalar_select %p39_p7, %s1637_s14, %s41_s11  }
  0x1c   : > { %s184_s29 = scalar_lea.vmem [#allocation3], %s1345_s25  ;;  %s192_s6 = scalar_lea.hbm %s2020_s0, %s1346_s28 }
  0x1d   : > { %s195_s30 = sshll.u32 %s184_s29, 4  ;;  %s193_s21 = sshll.u32 %s192_s6, 4  ;;  %s196_s30 = int_to_ptr.vmem [resolvable:$true] %s195_s30  ;;  %s194_s21 = int_to_ptr.hbm [resolvable:$true] %s193_s21 }
  0x1e   : > { %s181_s7 = scalar_lea.sflag [#allocation4], %s180_s24  ;;  %s1655_s8 = smov 192  }
  0x1f   : > { %s1656_s9 = smov 12   ;;  %207 = sbr.rel (%p1736_p8) target bundleno = 315 (0x13b), region = 32 }
  0x20   : > { %1370 = dma.hbm_to_vmem [thread:$0]  (!%p1368_p9), %s194_s21, 3072, %s196_s30, %s181_s7, %s1655_s8, %s1655_s8, %s1656_s9  }
  0x21   : > { %s1774_s11 = sand.u32 (!%p1736_p8), 1, %s1633_s13  }
  0x22   : > { %s1347_s19 = smul.u32 (!%p1736_p8), 192, %s1774_s11  ;;  %s210_s25 = scalar_lea.sflag (!%p1736_p8), [#allocation4], %s1774_s11 }
  0x24   : > { %s1778_s29 = scalar_lea.vmem [#allocation3], %s1347_s19 }
  0x25   : > { %1616 = dma.done.wait (%p1723_p4), %s210_s25, 3072  }
  0x26   : > { %1618 = vsyncadd (%p1723_p4), %s210_s25, 4294964224 }
  0x27   : > { %1620 = dma.done.wait (%p1713_p1), [#allocation7], 3136  }
  0x28   : > { %1622 = vsyncadd (%p1713_p1), [#allocation7], 4294964160  ;;  %v1303_v0 = vld [vmem:[#allocation6 + $0x38] sm:$0xff]  ;;  %v1302_v3 = vld [vmem:[#allocation6 + $0x30] sm:$0xff]  ;;  %s1074_s20 = sshll.u32 %s1774_s11, 7  ;;  %s1320_s27 = sshll.u32 %s1641_s15, 7 }
  0x29   : > { %v1788_v1 = vld [vmem:[#allocation6 + $0x78] sm:$0xff]  ;;  %639 = vmatpush.bf16.msra.mxu0 %v1303_v0  ;;  %1321 = vmatpush.bf16.msra.mxu3 %v1303_v0  ;;  %v1794_v4 = vld [vmem:[#allocation6 + $0x70] sm:$0xff]  ;;  %v1301_v6 = vld [vmem:[#allocation6 + $0x28] sm:$0xff]  ;;  %s1897_s22 = scalar_lea.vmem [#allocation9], %s1074_s20  ;;  %s953_s30 = scalar_lea.hbm %s2023_s3, %s1320_s27 }
  0x2a   : > { %v1790_v2 = vld [vmem:[#allocation6 + $0xb8] sm:$0xff]  ;;  %688 = vmatpush.bf16.msra.mxu1 %v1788_v1  ;;  %v1796_v5 = vld [vmem:[#allocation6 + $0xb0] sm:$0xff]  ;;  %v1309_v7 = vld [vmem:[#allocation6 + $0x68] sm:$0xff]  ;;  %s954_s4 = sshll.u32 %s1897_s22, 4  ;;  %s956_s5 = sshll.u32 %s953_s30, 4  ;;  %s955_s4 = int_to_ptr.vmem [resolvable:$true] %s954_s4  ;;  %s957_s5 = int_to_ptr.hbm [resolvable:$true] %s956_s5 }
  0x2b   : > { %737 = vmatpush.bf16.msra.mxu2 %v1790_v2  ;;  %v1800_v8 = vld [vmem:[#allocation6 + $0xa8] sm:$0xff]  ;;  %v1300_v9 = vld [vmem:[#allocation6 + $0x20] sm:$0xff]  ;;  %v1299_v12 = vld [vmem:[#allocation6 + $0x18] sm:$0xff]  ;;  %s942_s15 = scalar_lea.sflag [#allocation5], %s1774_s11  ;;  %s1577_s6 = sshra.s32 %s957_s5, 4  ;;  %s1578_s6 = int_to_ptr.hbm [resolvable:$true] %s1577_s6 }
  0x2c   : > { %v1308_v10 = vld [vmem:[#allocation6 + $0x60] sm:$0xff]  ;;  %v1307_v13 = vld [vmem:[#allocation6 + $0x58] sm:$0xff]  ;;  %v1298_v15 = vld [vmem:[#allocation6 + $0x10] sm:$0xff]  ;;  %s1579_s21 = scalar_lea.hbm %s1578_s6, 128  ;;  %s1583_s9 = scalar_lea.hbm %s2023_s3, 1024 }
  0x2d   : > { %640 = vmatpush.bf16.msra.mxu0 %v1302_v3  ;;  %1322 = vmatpush.bf16.msra.mxu3 %v1302_v3  ;;  %v1802_v11 = vld [vmem:[#allocation6 + $0xa0] sm:$0xff]  ;;  %v1806_v14 = vld [vmem:[#allocation6 + $0x98] sm:$0xff]  ;;  %v1306_v16 = vld [vmem:[#allocation6 + $0x50] sm:$0xff]  ;;  %p1580_p1 = scmp.ne.s32.totalorder %s1578_s6, %s1579_s21  ;;  %p1584_p8 = scmp.lt.s32.totalorder %s1578_s6, %s2023_s3 }
  0x2e   : > { %689 = vmatpush.bf16.msra.mxu1 %v1794_v4  ;;  %v1809_v17 = vld [vmem:[#allocation6 + $0x90] sm:$0xff]  ;;  %v1297_v18 = vld [vmem:[#allocation6 + $0x8] sm:$0xff]  ;;  %v1296_v21 = vld [vmem:[#allocation6] sm:$0xff]  ;;  %p1585_p10 = scmp.lt.s32.totalorder %s1583_s9, %s1579_s21 }
  0x2f   : > { %738 = vmatpush.bf16.msra.mxu2 %v1796_v5  ;;  %v1305_v19 = vld [vmem:[#allocation6 + $0x48] sm:$0xff]  ;;  %v1304_v22 = vld [vmem:[#allocation6 + $0x40] sm:$0xff]  ;;  %v1149_v26 = vld [vmem:[%s1778_s29 + $0x90] sm:$0xf]  ;;  %p1581_p2 = pnand %p1580_p1, %p1757_p5 }
  0x30   : > { %v1812_v20 = vld [vmem:[#allocation6 + $0x88] sm:$0xff]  ;;  %v1814_v23 = vld [vmem:[#allocation6 + $0x80] sm:$0xff]  ;;  %v1291_v27 = vld [vmem:[%s1778_s29 + $0x98] sm:$0xf0]  ;;  %p1586_p11 = por %p1585_p10, %p1584_p8 }
  0x31   : > { %641 = vmatpush.bf16.msra.mxu0 %v1301_v6  ;;  %1323 = vmatpush.bf16.msra.mxu3 %v1301_v6  ;;  %v1077_v24 = vld [vmem:[%s1778_s29] sm:$0xf]  ;;  %v1273_v25 = vld [vmem:[%s1778_s29 + $0x8] sm:$0xf0]  ;;  %v1272_v28 = vld [vmem:[%s1778_s29 + $0x4] sm:$0xf]  ;;  %v1150_v33 = vor.u32 %v1291_v27, %v1149_v26  ;;  %p1582_p4 = pneg %p1581_p2 }
  0x32   : > { %690 = vmatpush.bf16.msra.mxu1 %v1309_v7  ;;  %v1079_v29 = vld [vmem:[%s1778_s29 + $0xc] sm:$0xf0]  ;;  %v1085_v30 = vld [vmem:[%s1778_s29 + $0x8] sm:$0xf]  ;;  %v1274_v31 = vld [vmem:[%s1778_s29 + $0x10] sm:$0xf0]  ;;  %v1078_v32 = vor.u32 %v1273_v25, %v1077_v24 }
  0x33   : > { %739 = vmatpush.bf16.msra.mxu2 %v1800_v8  ;;  %v1082_v34 = vor.u32 %v1272_v28, %v1079_v29  ;;  %v1086_v35 = vor.u32 %v1274_v31, %v1085_v30  ;;  %v1089_v36 = vld [vmem:[%s1778_s29 + $0x18] sm:$0xf]  ;;  %v1276_v37 = vld [vmem:[%s1778_s29 + $0x20] sm:$0xf0]  ;;  %v1161_v38 = vld [vmem:[%s1778_s29 + $0xa8] sm:$0xf]  ;;  %p1587_p12 = pnand %p1586_p11, %p1582_p4 }
  0x34   : > { %v1294_v39 = vld [vmem:[%s1778_s29 + $0xb0] sm:$0xf0]  ;;  %v1275_v40 = vld [vmem:[%s1778_s29 + $0x1c] sm:$0xf]  ;;  %v1091_v41 = vld [vmem:[%s1778_s29 + $0x24] sm:$0xf0]  ;;  %v1090_v44 = vor.u32 %v1276_v37, %v1089_v36 }
  0x35   : > { %642 = vmatpush.bf16.msra.mxu0 %v1300_v9  ;;  %1324 = vmatpush.bf16.msra.mxu3 %v1300_v9  ;;  %v1097_v42 = vld [vmem:[%s1778_s29 + $0x20] sm:$0xf]  ;;  %v1277_v43 = vld [vmem:[%s1778_s29 + $0x28] sm:$0xf0]  ;;  %v1162_v45 = vor.u32 %v1294_v39, %v1161_v38  ;;  %v1094_v46 = vor.u32 %v1275_v40, %v1091_v41  ;;  %v1101_v48 = vld [vmem:[%s1778_s29 + $0x30] sm:$0xf] }
  0x36   : > { %691 = vmatpush.bf16.msra.mxu1 %v1308_v10  ;;  %v1098_v47 = vor.u32 %v1277_v43, %v1097_v42  ;;  %v1279_v49 = vld [vmem:[%s1778_s29 + $0x38] sm:$0xf0]  ;;  %v1278_v50 = vld [vmem:[%s1778_s29 + $0x34] sm:$0xf]  ;;  %v1151_v52 = vld [vmem:[%s1778_s29 + $0x9c] sm:$0xf0] }
  0x37   : > { %740 = vmatpush.bf16.msra.mxu2 %v1802_v11  ;;  %v1290_v51 = vld [vmem:[%s1778_s29 + $0x94] sm:$0xf]  ;;  %v1103_v53 = vld [vmem:[%s1778_s29 + $0x3c] sm:$0xf0]  ;;  %v1109_v54 = vld [vmem:[%s1778_s29 + $0x38] sm:$0xf]  ;;  %v1102_v56 = vor.u32 %v1279_v49, %v1101_v48 }
  0x38   : > { %v1280_v55 = vld [vmem:[%s1778_s29 + $0x40] sm:$0xf0]  ;;  %v1154_v57 = vor.u32 %v1290_v51, %v1151_v52  ;;  %v1106_v58 = vor.u32 %v1278_v50, %v1103_v53  ;;  %v1113_v60 = vld [vmem:[%s1778_s29 + $0x48] sm:$0xf]  ;;  %v1282_v61 = vld [vmem:[%s1778_s29 + $0x50] sm:$0xf0] }
  0x39   : > { %643 = vmatpush.bf16.msra.mxu0 %v1299_v12  ;;  %1325 = vmatpush.bf16.msra.mxu3 %v1299_v12  ;;  %v1110_v59 = vor.u32 %v1280_v55, %v1109_v54  ;;  %v1281_v62 = vld [vmem:[%s1778_s29 + $0x4c] sm:$0xf]  ;;  %v1163_v0 = vld [vmem:[%s1778_s29 + $0xb4] sm:$0xf0]  ;;  %v1283_v3 = vld [vmem:[%s1778_s29 + $0x58] sm:$0xf0] }
  0x3a   : > { %692 = vmatpush.bf16.msra.mxu1 %v1307_v13  ;;  %v1293_v63 = vld [vmem:[%s1778_s29 + $0xac] sm:$0xf]  ;;  %v1292_v12 = vld [vmem:[%s1778_s29 + $0xa0] sm:$0xf0]  ;;  %v1169_v24 = vld [vmem:[%s1778_s29 + $0xb0] sm:$0xf] }
  0x3b   : > { %741 = vmatpush.bf16.msra.mxu2 %v1806_v14  ;;  %v1166_v6 = vor.u32 %v1293_v63, %v1163_v0  ;;  %v1285_v9 = vld [vmem:[%s1778_s29 + $0x68] sm:$0xf0]  ;;  %v1139_v25 = vld [vmem:[%s1778_s29 + $0x84] sm:$0xf0]  ;;  %v1145_v26 = vld [vmem:[%s1778_s29 + $0x80] sm:$0xf] }
  0x3c   : > { %v1289_v27 = vld [vmem:[%s1778_s29 + $0x88] sm:$0xf0]  ;;  %v1878_v36 = vld [vmem:[#allocation8 + $0x3] ss:$0 sm:$0xff]  ;;  %v1880_v39 = vld [vmem:[#allocation8] ss:$0 sm:$0xff] }
  0x3d   : > { %644 = vmatpush.bf16.msra.mxu0 %v1298_v15  ;;  %1326 = vmatpush.bf16.msra.mxu3 %v1298_v15  ;;  %v1286_v15 = vld [vmem:[%s1778_s29 + $0x70] sm:$0xf0]  ;;  %v1146_v31 = vor.u32 %v1289_v27, %v1145_v26  ;;  %v1886_v49 = vld [vmem:[#allocation8 + $0x1] ss:$0 sm:$0xff]  ;;  %v1890_v52 = vld [vmem:[#allocation8 + $0x2] ss:$0 sm:$0xff] }
  0x3e   : > { %693 = vmatpush.bf16.msra.mxu1 %v1306_v16 }
  0x3f   : > { %742 = vmatpush.bf16.msra.mxu2 %v1809_v17 }
  0x41   : > { %645 = vmatpush.bf16.msra.mxu0 %v1297_v18  ;;  %1327 = vmatpush.bf16.msra.mxu3 %v1297_v18 }
  0x42   : > { %694 = vmatpush.bf16.msra.mxu1 %v1305_v19 }
  0x43   : > { %743 = vmatpush.bf16.msra.mxu2 %v1812_v20 }
  0x45   : > { %646 = vmatpush.bf16.msra.mxu0 %v1296_v21  ;;  %1328 = vmatpush.bf16.msra.mxu3 %v1296_v21  ;;  %v1288_v21 = vld [vmem:[%s1778_s29 + $0x80] sm:$0xf0] }
  0x46   : > { %695 = vmatpush.bf16.msra.mxu1 %v1304_v22 }
  0x47   : > { %744 = vmatpush.bf16.msra.mxu2 %v1814_v23 }
  0x48   : > { %647 = vmatmul.bf16.vlgmr.msra.gmra.mxu0 %v1078_v32  ;;  %677 = vmatmul.bf16.vlgmr.msra.gmra.mxu3 %v1150_v33 }
  0x49   : > { %1329 = vmatpush.bf16.msrb.mxu3 %v1788_v1  ;;  %696 = vmatmul.bf16.vlgmr.msra.gmra.mxu1 %v1082_v34  ;;  %v1115_v1 = vld [vmem:[%s1778_s29 + $0x54] sm:$0xf0] }
  0x4a   : > { %745 = vmatmul.bf16.vlgmr.msra.gmra.mxu2 %v1086_v35 }
  0x4d   : > { %1330 = vmatpush.bf16.msrb.mxu3 %v1794_v4  ;;  %v1114_v4 = vor.u32 %v1282_v61, %v1113_v60 }
  0x51   : > { %1331 = vmatpush.bf16.msrb.mxu3 %v1309_v7 }
  0x55   : > { %1332 = vmatpush.bf16.msrb.mxu3 %v1308_v10  ;;  %v1284_v10 = vld [vmem:[%s1778_s29 + $0x64] sm:$0xf] }
  0x58   : > { %652 = vmatmul.bf16.gmra.mxu0 %v1090_v44  ;;  %682 = vmatmul.bf16.gmra.mxu3 %v1162_v45 }
  0x59   : > { %1333 = vmatpush.bf16.msrb.mxu3 %v1307_v13  ;;  %701 = vmatmul.bf16.gmra.mxu1 %v1094_v46  ;;  %v1127_v13 = vld [vmem:[%s1778_s29 + $0x6c] sm:$0xf0] }
  0x5a   : > { %750 = vmatmul.bf16.gmra.mxu2 %v1098_v47  ;;  %v1130_v18 = vor.u32 %v1284_v10, %v1127_v13 }
  0x5d   : > { %1334 = vmatpush.bf16.msrb.mxu3 %v1306_v16 }
  0x61   : > { %1335 = vmatpush.bf16.msrb.mxu3 %v1305_v19 }
  0x65   : > { %1336 = vmatpush.bf16.msrb.mxu3 %v1304_v22  ;;  %v1287_v22 = vld [vmem:[%s1778_s29 + $0x7c] sm:$0xf] }
  0x66   : > { %v1142_v30 = vor.u32 %v1287_v22, %v1139_v25 }
  0x68   : > { %657 = vmatmul.bf16.gmra.mxu0 %v1102_v56  ;;  %726 = vmatmul.bf16.vlgmr.msrb.gmra.mxu3 %v1154_v57 }
  0x69   : > { %1337 = vmatpush.bf16.msra.mxu3 %v1790_v2  ;;  %706 = vmatmul.bf16.gmra.mxu1 %v1106_v58  ;;  %v1121_v2 = vld [vmem:[%s1778_s29 + $0x50] sm:$0xf] }
  0x6a   : > { %755 = vmatmul.bf16.gmra.mxu2 %v1110_v59  ;;  %v1122_v7 = vor.u32 %v1283_v3, %v1121_v2 }
  0x6d   : > { %1338 = vmatpush.bf16.msra.mxu3 %v1796_v5  ;;  %v1118_v5 = vor.u32 %v1281_v62, %v1115_v1 }
  0x71   : > { %1339 = vmatpush.bf16.msra.mxu3 %v1800_v8  ;;  %v1125_v8 = vld [vmem:[%s1778_s29 + $0x60] sm:$0xf] }
  0x72   : > { %v1126_v16 = vor.u32 %v1285_v9, %v1125_v8 }
  0x75   : > { %1340 = vmatpush.bf16.msra.mxu3 %v1802_v11  ;;  %v1157_v11 = vld [vmem:[%s1778_s29 + $0x98] sm:$0xf] }
  0x78   : > { %662 = vmatmul.bf16.gmra.mxu0 %v1114_v4  ;;  %731 = vmatmul.bf16.gmra.mxu3 %v1166_v6 }
  0x79   : > { %1341 = vmatpush.bf16.msra.mxu3 %v1806_v14  ;;  %711 = vmatmul.bf16.gmra.mxu1 %v1118_v5  ;;  %v1133_v14 = vld [vmem:[%s1778_s29 + $0x68] sm:$0xf] }
  0x7a   : > { %760 = vmatmul.bf16.gmra.mxu2 %v1122_v7  ;;  %v1134_v19 = vor.u32 %v1286_v15, %v1133_v14 }
  0x7d   : > { %1342 = vmatpush.bf16.msra.mxu3 %v1809_v17  ;;  %v1158_v17 = vor.u32 %v1292_v12, %v1157_v11 }
  0x81   : > { %1343 = vmatpush.bf16.msra.mxu3 %v1812_v20  ;;  %v1137_v20 = vld [vmem:[%s1778_s29 + $0x78] sm:$0xf] }
  0x82   : > { %v1138_v28 = vor.u32 %v1288_v21, %v1137_v20 }
  0x85   : > { %1344 = vmatpush.bf16.msra.mxu3 %v1814_v23  ;;  %v1295_v23 = vld [vmem:[%s1778_s29 + $0xb8] sm:$0xf0] }
  0x86   : > { %v1170_v29 = vor.u32 %v1295_v23, %v1169_v24 }
  0x88   : > { %667 = vmatmul.bf16.gmra.mxu0 %v1126_v16  ;;  %775 = vmatmul.bf16.vlgmr.msra.gmra.mxu3 %v1158_v17 }
  0x89   : > { %716 = vmatmul.bf16.gmra.mxu1 %v1130_v18 }
  0x8a   : > { %765 = vmatmul.bf16.gmra.mxu2 %v1134_v19 }
  0x98   : > { %672 = vmatmul.bf16.gmra.mxu0 %v1138_v28  ;;  %780 = vmatmul.bf16.gmra.mxu3 %v1170_v29 }
  0x99   : > { %721 = vmatmul.bf16.gmra.mxu1 %v1142_v30 }
  0x9a   : > { %770 = vmatmul.bf16.gmra.mxu2 %v1146_v31 }
  0xc5   : > { %v648_v32 = vpop.f32.mrf.mxu0 }
  0xc6   : > { %v697_v33 = vpop.f32.mrf.mxu1 }
  0xc7   : > { %v698_v34 = vadd.f32 %v697_v33, %v648_v32 }
  0xcb   : > { %v1876_v35 = vpop.f32.mrf.mxu3 }
  0xcd   : > { %v746_v37 = vpop.f32.mrf.mxu2  ;;  %v650_v40 = vpop.f32.mrf.mxu0 }
  0xce   : > { %v747_v38 = vadd.f32 %v746_v37, %v698_v34  ;;  %v699_v41 = vpop.f32.mrf.mxu1 }
  0xcf   : > { %v700_v44 = vadd.f32 %v699_v41, %v650_v40 }
  0xd0   : > { %v842_v42 = vmul.f32 %v1878_v36, %v747_v38 }
  0xd2   : > { %v859_v43 = vadd.f32 %v1880_v39, %v842_v42 }
  0xd3   : > { %v1884_v45 = vpop.f32.mrf.mxu3 }
  0xd4   : > { %1441 = vtanh.f32 %v859_v43 }
  0xd5   : > { %v748_v46 = vpop.f32.mrf.mxu2  ;;  %v653_v48 = vpop.f32.mrf.mxu0 }
  0xd6   : > { %v749_v47 = vadd.f32 %v748_v46, %v700_v44  ;;  %v702_v50 = vpop.f32.mrf.mxu1 }
  0xd7   : > { %v703_v55 = vadd.f32 %v702_v50, %v653_v48 }
  0xd8   : > { %v843_v51 = vmul.f32 %v1878_v36, %v749_v47 }
  0xda   : > { %v1442_v53 = vpop.eup %1441  ;;  %v860_v54 = vadd.f32 %v1880_v39, %v843_v51 }
  0xdb   : > { %v892_v56 = vmul.f32 %v1442_v53, %v1886_v49  ;;  %v1894_v57 = vpop.f32.mrf.mxu3 }
  0xdc   : > { %1443 = vtanh.f32 %v860_v54 }
  0xdd   : > { %v909_v58 = vadd.f32 %v1890_v52, %v892_v56  ;;  %v751_v59 = vpop.f32.mrf.mxu2  ;;  %v655_v61 = vpop.f32.mrf.mxu0 }
  0xde   : > { %v752_v60 = vadd.f32 %v751_v59, %v703_v55  ;;  %v704_v62 = vpop.f32.mrf.mxu1 }
  0xdf   : > { %925 = vst [vmem:[%s1897_s22] sm:$0xff] %v909_v58  ;;  %v705_v3 = vadd.f32 %v704_v62, %v655_v61 }
  0xe0   : > { %v844_v63 = vmul.f32 %v1878_v36, %v752_v60 }
  0xe2   : > { %v1444_v0 = vpop.eup %1443  ;;  %v861_v1 = vadd.f32 %v1880_v39, %v844_v63 }
  0xe3   : > { %v893_v2 = vmul.f32 %v1444_v0, %v1886_v49  ;;  %v1903_v4 = vpop.f32.mrf.mxu3 }
  0xe4   : > { %1445 = vtanh.f32 %v861_v1 }
  0xe5   : > { %v910_v6 = vadd.f32 %v1890_v52, %v893_v2  ;;  %v753_v5 = vpop.f32.mrf.mxu2  ;;  %v658_v8 = vpop.f32.mrf.mxu0 }
  0xe6   : > { %v754_v7 = vadd.f32 %v753_v5, %v705_v3  ;;  %v707_v9 = vpop.f32.mrf.mxu1 }
  0xe7   : > { %926 = vst [vmem:[%s1897_s22 + $0x8] sm:$0xff] %v910_v6  ;;  %v708_v13 = vadd.f32 %v707_v9, %v658_v8 }
  0xe8   : > { %v845_v10 = vmul.f32 %v1878_v36, %v754_v7 }
  0xea   : > { %v1446_v11 = vpop.eup %1445  ;;  %v862_v12 = vadd.f32 %v1880_v39, %v845_v10 }
  0xeb   : > { %v894_v14 = vmul.f32 %v1446_v11, %v1886_v49  ;;  %v727_v15 = vpop.f32.mrf.mxu3 }
  0xec   : > { %1447 = vtanh.f32 %v862_v12  ;;  %v728_v1 = vadd.f32 %v727_v15, %v1876_v35 }
  0xed   : > { %v911_v16 = vadd.f32 %v1890_v52, %v894_v14  ;;  %v756_v17 = vpop.f32.mrf.mxu2  ;;  %v660_v19 = vpop.f32.mrf.mxu0 }
  0xee   : > { %v757_v18 = vadd.f32 %v756_v17, %v708_v13  ;;  %v709_v20 = vpop.f32.mrf.mxu1 }
  0xef   : > { %927 = vst [vmem:[%s1897_s22 + $0x10] sm:$0xff] %v911_v16  ;;  %v710_v25 = vadd.f32 %v709_v20, %v660_v19 }
  0xf0   : > { %v846_v21 = vmul.f32 %v1878_v36, %v757_v18 }
  0xf2   : > { %v1448_v22 = vpop.eup %1447  ;;  %v863_v24 = vadd.f32 %v1880_v39, %v846_v21 }
  0xf3   : > { %v895_v23 = vmul.f32 %v1448_v22, %v1886_v49  ;;  %v729_v26 = vpop.f32.mrf.mxu3 }
  0xf4   : > { %1449 = vtanh.f32 %v863_v24  ;;  %v730_v15 = vadd.f32 %v729_v26, %v1884_v45 }
  0xf5   : > { %v912_v27 = vadd.f32 %v1890_v52, %v895_v23  ;;  %v758_v28 = vpop.f32.mrf.mxu2  ;;  %v663_v30 = vpop.f32.mrf.mxu0 }
  0xf6   : > { %v759_v29 = vadd.f32 %v758_v28, %v710_v25  ;;  %v712_v31 = vpop.f32.mrf.mxu1 }
  0xf7   : > { %928 = vst [vmem:[%s1897_s22 + $0x18] sm:$0xff] %v912_v27  ;;  %v713_v37 = vadd.f32 %v712_v31, %v663_v30 }
  0xf8   : > { %v847_v32 = vmul.f32 %v1878_v36, %v759_v29 }
  0xfa   : > { %v1450_v33 = vpop.eup %1449  ;;  %v864_v34 = vadd.f32 %v1880_v39, %v847_v32 }
  0xfb   : > { %v896_v38 = vmul.f32 %v1450_v33, %v1886_v49  ;;  %v732_v40 = vpop.f32.mrf.mxu3 }
  0xfc   : > { %1451 = vtanh.f32 %v864_v34  ;;  %v733_v32 = vadd.f32 %v732_v40, %v1894_v57 }
  0xfd   : > { %v913_v41 = vadd.f32 %v1890_v52, %v896_v38  ;;  %v761_v42 = vpop.f32.mrf.mxu2  ;;  %v665_v44 = vpop.f32.mrf.mxu0 }
  0xfe   : > { %v762_v43 = vadd.f32 %v761_v42, %v713_v37  ;;  %v714_v46 = vpop.f32.mrf.mxu1 }
  0xff   : > { %929 = vst [vmem:[%s1897_s22 + $0x20] sm:$0xff] %v913_v41  ;;  %v715_v53 = vadd.f32 %v714_v46, %v665_v44 }
 0x100   : > { %v848_v47 = vmul.f32 %v1878_v36, %v762_v43 }
 0x102   : > { %v1452_v48 = vpop.eup %1451  ;;  %v865_v50 = vadd.f32 %v1880_v39, %v848_v47 }
 0x103   : > { %v897_v51 = vmul.f32 %v1452_v48, %v1886_v49  ;;  %v1925_v54 = vpop.f32.mrf.mxu3 }
 0x104   : > { %1453 = vtanh.f32 %v865_v50 }
 0x105   : > { %v914_v55 = vadd.f32 %v1890_v52, %v897_v51  ;;  %v763_v56 = vpop.f32.mrf.mxu2  ;;  %v668_v59 = vpop.f32.mrf.mxu0 }
 0x106   : > { %v764_v58 = vadd.f32 %v763_v56, %v715_v53  ;;  %v717_v60 = vpop.f32.mrf.mxu1 }
 0x107   : > { %930 = vst [vmem:[%s1897_s22 + $0x28] sm:$0xff] %v914_v55  ;;  %v718_v0 = vadd.f32 %v717_v60, %v668_v59  ;;  %v735_v55 = vadd.f32 %v1925_v54, %v1903_v4 }
 0x108   : > { %v849_v61 = vmul.f32 %v1878_v36, %v764_v58 }
 0x10a   : > { %v1454_v62 = vpop.eup %1453  ;;  %v866_v63 = vadd.f32 %v1880_v39, %v849_v61 }
 0x10b   : > { %v898_v2 = vmul.f32 %v1454_v62, %v1886_v49  ;;  %v776_v3 = vpop.f32.mrf.mxu3 }
 0x10c   : > { %1455 = vtanh.f32 %v866_v63  ;;  %v777_v7 = vadd.f32 %v776_v3, %v728_v1 }
 0x10d   : > { %v915_v6 = vadd.f32 %v1890_v52, %v898_v2  ;;  %v766_v5 = vpop.f32.mrf.mxu2  ;;  %v670_v9 = vpop.f32.mrf.mxu0 }
 0x10e   : > { %v767_v8 = vadd.f32 %v766_v5, %v718_v0  ;;  %v854_v10 = vmul.f32 %v1878_v36, %v777_v7  ;;  %v719_v11 = vpop.f32.mrf.mxu1 }
 0x10f   : > { %931 = vst [vmem:[%s1897_s22 + $0x30] sm:$0xff] %v915_v6  ;;  %v720_v17 = vadd.f32 %v719_v11, %v670_v9 }
 0x110   : > { %v850_v12 = vmul.f32 %v1878_v36, %v767_v8  ;;  %v871_v13 = vadd.f32 %v1880_v39, %v854_v10 }
 0x112   : > { %v1456_v35 = vpop.eup %1455  ;;  %v867_v14 = vadd.f32 %v1880_v39, %v850_v12  ;;  %1457 = vtanh.f32 %v871_v13 }
 0x113   : > { %v899_v16 = vmul.f32 %v1456_v35, %v1886_v49  ;;  %v778_v18 = vpop.f32.mrf.mxu3 }
 0x114   : > { %1459 = vtanh.f32 %v867_v14  ;;  %v779_v21 = vadd.f32 %v778_v18, %v730_v15 }
 0x115   : > { %v916_v19 = vadd.f32 %v1890_v52, %v899_v16  ;;  %v768_v20 = vpop.f32.mrf.mxu2  ;;  %v673_v23 = vpop.f32.mrf.mxu0 }
 0x116   : > { %v769_v22 = vadd.f32 %v768_v20, %v720_v17  ;;  %v855_v24 = vmul.f32 %v1878_v36, %v779_v21  ;;  %v722_v25 = vpop.f32.mrf.mxu1 }
 0x117   : > { %932 = vst [vmem:[%s1897_s22 + $0x38] sm:$0xff] %v916_v19  ;;  %v723_v31 = vadd.f32 %v722_v25, %v673_v23 }
 0x118   : > { %v851_v27 = vmul.f32 %v1878_v36, %v769_v22  ;;  %v1458_v45 = vpop.eup %1457  ;;  %v872_v26 = vadd.f32 %v1880_v39, %v855_v24 }
 0x119   : > { %v904_v29 = vmul.f32 %v1458_v45, %v1886_v49 }
 0x11a   : > { %v1460_v28 = vpop.eup %1459  ;;  %v868_v30 = vadd.f32 %v1880_v39, %v851_v27  ;;  %1461 = vtanh.f32 %v872_v26 }
 0x11b   : > { %v900_v33 = vmul.f32 %v1460_v28, %v1886_v49  ;;  %v921_v34 = vadd.f32 %v1890_v52, %v904_v29  ;;  %v781_v37 = vpop.f32.mrf.mxu3 }
 0x11c   : > { %1463 = vtanh.f32 %v868_v30  ;;  %v782_v42 = vadd.f32 %v781_v37, %v733_v32 }
 0x11d   : > { %v917_v38 = vadd.f32 %v1890_v52, %v900_v33  ;;  %v771_v41 = vpop.f32.mrf.mxu2  ;;  %937 = vst [vmem:[%s1897_s22 + $0x60] sm:$0xff] %v921_v34  ;;  %v675_v40 = vpop.f32.mrf.mxu0 }
 0x11e   : > { %v772_v43 = vadd.f32 %v771_v41, %v723_v31  ;;  %v856_v44 = vmul.f32 %v1878_v36, %v782_v42  ;;  %v724_v48 = vpop.f32.mrf.mxu1 }
 0x11f   : > { %933 = vst [vmem:[%s1897_s22 + $0x40] sm:$0xff] %v917_v38  ;;  %v725_v59 = vadd.f32 %v724_v48, %v675_v40 }
 0x120   : > { %v852_v46 = vmul.f32 %v1878_v36, %v772_v43  ;;  %v1462_v47 = vpop.eup %1461  ;;  %v873_v57 = vadd.f32 %v1880_v39, %v856_v44 }
 0x121   : > { %v905_v51 = vmul.f32 %v1462_v47, %v1886_v49 }
 0x122   : > { %v1464_v50 = vpop.eup %1463  ;;  %v869_v53 = vadd.f32 %v1880_v39, %v852_v46  ;;  %1465 = vtanh.f32 %v873_v57 }
 0x123   : > { %v901_v56 = vmul.f32 %v1464_v50, %v1886_v49  ;;  %v922_v58 = vadd.f32 %v1890_v52, %v905_v51  ;;  %v783_v60 = vpop.f32.mrf.mxu3 }
 0x124   : > { %1467 = vtanh.f32 %v869_v53  ;;  %v784_v63 = vadd.f32 %v783_v60, %v735_v55 }
 0x125   : > { %v918_v61 = vadd.f32 %v1890_v52, %v901_v56  ;;  %v773_v62 = vpop.f32.mrf.mxu2  ;;  %938 = vst [vmem:[%s1897_s22 + $0x68] sm:$0xff] %v922_v58 }
 0x126   : > { %v774_v0 = vadd.f32 %v773_v62, %v725_v59  ;;  %v857_v4 = vmul.f32 %v1878_v36, %v784_v63 }
 0x127   : > { %934 = vst [vmem:[%s1897_s22 + $0x48] sm:$0xff] %v918_v61 }
 0x128   : > { %v853_v54 = vmul.f32 %v1878_v36, %v774_v0  ;;  %v1466_v1 = vpop.eup %1465  ;;  %v874_v2 = vadd.f32 %v1880_v39, %v857_v4 }
 0x129   : > { %v906_v6 = vmul.f32 %v1466_v1, %v1886_v49 }
 0x12a   : > { %v1468_v3 = vpop.eup %1467  ;;  %v870_v5 = vadd.f32 %v1880_v39, %v853_v54  ;;  %1469 = vtanh.f32 %v874_v2 }
 0x12b   : > { %v902_v7 = vmul.f32 %v1468_v3, %v1886_v49  ;;  %v923_v8 = vadd.f32 %v1890_v52, %v906_v6 }
 0x12c   : > { %1471 = vtanh.f32 %v870_v5 }
 0x12d   : > { %v919_v36 = vadd.f32 %v1890_v52, %v902_v7  ;;  %939 = vst [vmem:[%s1897_s22 + $0x70] sm:$0xff] %v923_v8 }
 0x12f   : > { %935 = vst [vmem:[%s1897_s22 + $0x50] sm:$0xff] %v919_v36 }
 0x130   : > { %v1470_v9 = vpop.eup %1469 }
 0x131   : > { %v907_v10 = vmul.f32 %v1470_v9, %v1886_v49 }
 0x132   : > { %v1472_v39 = vpop.eup %1471 }
 0x133   : > { %v903_v11 = vmul.f32 %v1472_v39, %v1886_v49  ;;  %v924_v12 = vadd.f32 %v1890_v52, %v907_v10 }
 0x135   : > { %v920_v13 = vadd.f32 %v1890_v52, %v903_v11  ;;  %940 = vst [vmem:[%s1897_s22 + $0x78] sm:$0xff] %v924_v12 }
 0x137   : > { %936 = vst [vmem:[%s1897_s22 + $0x58] sm:$0xff] %v920_v13 }
 0x138   : > { %1590 = shalt.err (!%p1587_p12)
}
 0x139   : > { %s1657_s11 = smov 128   ;;  %s1658_s29 = smov 8  }
 0x13a   : > { %1358 = dma.vmem_to_hbm [thread:$0]  (%p1757_p5), %s955_s4, 2048, %s957_s5, %s942_s15, %s1657_s11, %s1657_s11, %s1658_s29  }
 0x13b PF: > { %p1380_p13 = scmp.ge.s32.totalorder %s1649_s17, 2  ;;  %s971_s20 = sand.u32 1, %s1629_s12  }
 0x13c   : > { %s972_s22 = scalar_lea.sflag [#allocation5], %s971_s20 }
 0x13d   : > { %p1372_p0 = pnand %p1380_p13, %p1728_p6 }
 0x13f   : > { %p1373_p3 = pneg %p1372_p0 }
 0x141   : > { %1624 = dma.done.wait (%p1373_p3), %s972_s22, 2048  }
 0x142   : > { %1626 = vsyncadd (%p1373_p3), %s972_s22, 4294965248  ;;  %s20_s17 = sadd.s32 1, %s1649_s17   ;;  %s2030_s12 = smov %s1633_s13 }
 0x143   : > { %p17_p7 = scmp.ge.s32.totalorder %s20_s17, 10   ;;  %s2031_s13 = smov %s1637_s14 }
 0x144   : > { %s2032_s14 = smov %s1765_s26  ;;  %s2033_s15 = smov %s1645_s16 }
 0x145   : > { %s2034_s16 = smov %s2036_s10  ;;  %19 = sbr.rel (!%p17_p7) target bundleno = 7 (0x7), region = 94 }
 0x14a   :  { %978 = vsyncpa [#allocation4], 1 }
 0x14b   :  { %980 = vsyncpa [#allocation4 + $0x1], 1 }
 0x14c   :  { %981 = vsyncpa [#allocation7], 1 }
 0x14d   :  { %982 = vsyncpa [#allocation5], 1 }
 0x14e   :  { %984 = vsyncpa [#allocation5 + $0x1], 1 }

</bundles_post_ra>
